<compile_context>
chip_gen: v5e
topology: v5e:2x2
jax: 0.10.0
libtpu: 0.0.40
codegen_flags: <defaults>
</compile_context>

<pallas_src>
import jax
import jax.numpy as jnp
from jax.experimental import pallas as pl
from jax.experimental.pallas import tpu as pltpu


def _agg_transform_kernel(a_ref, y_ref, dinv_ref, wt_ref, b_ref, o_ref, acc_ref):
    """Aggregate-then-transform (used when F_in <= F_out).

    grid = (row tiles i, A-column tiles k); k is the contraction axis.
      a_ref   : [TM, TK]    int8 tile of A_hat (a[i, j] = multiplicity of edge j -> i)
      y_ref   : [TK, F_in]  bf16, rows of D^{-1/2} X for this k block
      dinv_ref: [TM, 1]     f32, D^{-1/2} for this row block
      wt_ref  : [F_in, Fp]  f32, W^T padded to lane width
      b_ref   : [1, Fp]     f32, bias padded to lane width
      o_ref   : [TM, Fp]    f32 output tile (lane dense)
      acc_ref : [TM, F_in]  f32 scratch accumulator (A_hat @ D^{-1/2} X)
    """
    k = pl.program_id(1)

    @pl.when(k == 0)
    def _():
        acc_ref[...] = jnp.zeros_like(acc_ref)

    # int8 -> bf16 cast on the VPU (hidden under the A DMA), bf16 x bf16 MXU, f32 accumulate.
    acc_ref[...] += jnp.dot(a_ref[...].astype(jnp.bfloat16), y_ref[...],
                            preferred_element_type=jnp.float32)

    @pl.when(k == pl.num_programs(1) - 1)
    def _():
        # Small feature transform + normalization + bias, once per row tile.
        z = jnp.dot(acc_ref[...], wt_ref[...], preferred_element_type=jnp.float32)
        o_ref[...] = dinv_ref[...] * z + b_ref[...]


def _agg_only_kernel(a_ref, y_ref, dinv_ref, b_ref, o_ref, acc_ref):
    """Pre-transformed features (used when F_out < F_in): stream D^{-1/2} X W^T through A_hat.

      y_ref   : [TK, Fp]  bf16, rows of D^{-1/2} (X W^T), lane-dense padded
      acc_ref : [TM, Fp]  f32 scratch accumulator
    """
    k = pl.program_id(1)

    @pl.when(k == 0)
    def _():
        acc_ref[...] = jnp.zeros_like(acc_ref)

    acc_ref[...] += jnp.dot(a_ref[...].astype(jnp.bfloat16), y_ref[...],
                            preferred_element_type=jnp.float32)

    @pl.when(k == pl.num_programs(1) - 1)
    def _():
        o_ref[...] = dinv_ref[...] * acc_ref[...] + b_ref[...]


def _round_up(v, m):
    return ((v + m - 1) // m) * m


def gcn_forward(x, edge_index, weight, bias, *, tile_m=512, tile_k=1024):
    """GCNConv forward.

    x          : [N, F_in]  float32 node features
    edge_index : [2, E]     int32, edge_index[0]=source, edge_index[1]=target
    weight     : [F_out, F_in]  (torch nn.Linear layout)
    bias       : [F_out]
    tile_m     : output-row tile (bounds accumulator / output VMEM)
    tile_k     : streaming tile along A's column axis (pure bandwidth axis)
    """
    n, f_in = x.shape
    f_out = weight.shape[0]
    e = edge_index.shape[1]
    src, dst = edge_index[0], edge_index[1]

    # ---- tile selection (no gcd fallback): force 128 multiples, cap at the 128-rounded N,
    #      and pad rows / cols up to the chosen tiles independently. ----
    tile_m = max(128, (int(tile_m) // 128) * 128)
    tile_k = max(128, (int(tile_k) // 128) * 128)
    n128 = _round_up(n, 128)
    tm = min(tile_m, n128)
    tk = min(tile_k, n128)
    n_pad_m = _round_up(n, tm)      # A / output rows
    n_pad_k = _round_up(n, tk)      # A columns / streamed-feature rows
    f_pad = _round_up(f_out, 128)   # lane-dense output width

    # ---- degree / symmetric normalization, O(E) (no N^2 reduction) ----
    in_count = jax.ops.segment_sum(jnp.ones((e,), jnp.float32), dst, num_segments=n)
    self_cnt = jax.ops.segment_sum((src == dst).astype(jnp.float32), dst, num_segments=n)
    deg = in_count + jnp.where(self_cnt > 0.0, 0.0, 1.0)        # + added self loop if missing
    dinv = jnp.where(deg > 0.0, jax.lax.rsqrt(deg), 0.0)        # [N]

    # ---- pick the contraction side: aggregate over min(F_in, F_out) ----
    pre_transformed = f_out < f_in
    if pre_transformed:
        feats = jnp.dot(x.astype(jnp.float32), weight.T.astype(jnp.float32))   # [N, F_out]
        y_w = f_pad                         # lane-dense streamed width
        acc_w = f_pad
    else:
        feats = x.astype(jnp.float32)                                           # [N, F_in]
        y_w = f_in
        acc_w = f_in
    y = dinv[:, None] * feats               # scale once before streaming through A_hat

    # ---- padded operands built directly at final dtype / shape ----
    # int8 adjacency: exact for edge multiplicities <= 127; halves/quarters the dominant
    # HBM stream vs bf16/f32.  Upcast to bf16 happens in-kernel (portable, MXU sees bf16).
    a_p = jnp.zeros((n_pad_m, n_pad_k), jnp.int8)
    a_p = a_p.at[dst, src].add(jnp.ones((e,), jnp.int8))
    idx = jnp.arange(n)
    diag = a_p[idx, idx]
    a_p = a_p.at[idx, idx].add(jnp.where(diag == 0, 1, 0).astype(jnp.int8))

    y_p = jnp.zeros((n_pad_k, y_w), jnp.bfloat16).at[:n, :y.shape[1]].set(y.astype(jnp.bfloat16))
    d_p = jnp.zeros((n_pad_m, 1), jnp.float32).at[:n, 0].set(dinv)
    b_p = jnp.zeros((1, f_pad), jnp.float32).at[0, :f_out].set(bias.astype(jnp.float32))

    grid = (n_pad_m // tm, n_pad_k // tk)

    in_specs = [
        pl.BlockSpec((tm, tk), lambda i, k: (i, k)),        # A_hat tile (int8)
        pl.BlockSpec((tk, y_w), lambda i, k: (k, 0)),       # streamed features (bf16)
        pl.BlockSpec((tm, 1), lambda i, k: (i, 0)),         # D^{-1/2} for output rows
    ]
    operands = [a_p, y_p, d_p]

    if pre_transformed:
        kernel = _agg_only_kernel
        flops = 2 * n_pad_m * n_pad_k * y_w
    else:
        wt_p = jnp.zeros((f_in, f_pad), jnp.float32).at[:, :f_out].set(
            weight.T.astype(jnp.float32))
        in_specs.append(pl.BlockSpec((f_in, f_pad), lambda i, k: (0, 0)))   # W^T (padded)
        operands.append(wt_p)
        kernel = _agg_transform_kernel
        flops = 2 * n_pad_m * n_pad_k * y_w + 2 * n_pad_m * f_in * f_pad

    in_specs.append(pl.BlockSpec((1, f_pad), lambda i, k: (0, 0)))          # bias (padded)
    operands.append(b_p)

    cost = pl.CostEstimate(
        flops=int(flops),
        transcendentals=0,
        bytes_accessed=int(a_p.size                    # int8 A stream (dominant)
                           + grid[0] * y_p.size * 2    # y re-streamed per row tile
                           + n_pad_m * f_pad * 4       # f32 output writeback
                           + n_pad_m * 4),             # dinv
    )

    out = pl.pallas_call(
        kernel,
        out_shape=jax.ShapeDtypeStruct((n_pad_m, f_pad), jnp.float32),
        grid_spec=pltpu.PrefetchScalarGridSpec(
            num_scalar_prefetch=0,
            grid=grid,
            in_specs=in_specs,
            out_specs=pl.BlockSpec((tm, f_pad), lambda i, k: (i, 0)),
            scratch_shapes=[pltpu.VMEM((tm, acc_w), jnp.float32)],
        ),
        compiler_params=pltpu.CompilerParams(
            dimension_semantics=("parallel", "arbitrary"),
            vmem_limit_bytes=32 * 1024 * 1024),
        cost_estimate=cost,
    )(*operands)

    return out[:n, :f_out]


def gcn_reference(x, edge_index, weight, bias):
    """Plain-JAX f32 reference mirroring torch_geometric GCNConv."""
    n = x.shape[0]
    src, dst = edge_index[0], edge_index[1]
    a = jnp.zeros((n, n), jnp.float32).at[dst, src].add(1.0)
    idx = jnp.arange(n)
    diag = a[idx, idx]
    a = a.at[idx, idx].add(jnp.where(diag == 0.0, 1.0, 0.0))
    deg = a.sum(axis=1)
    dinv = jnp.where(deg > 0, deg ** -0.5, 0.0)
    a_norm = dinv[:, None] * a * dinv[None, :]
    return a_norm @ (x @ weight.T) + bias[None, :]


if __name__ == "__main__":
    key = jax.random.PRNGKey(0)
    k_x, k_w, k_b, k_e, k_x2, k_w2, k_b2 = jax.random.split(key, 7)

    N = 256         # number of nodes
    E = 1024        # number of edges
    F_IN = 4        # in_channels
    F_OUT = 8       # out_channels

    # Node features
    x = jax.random.normal(k_x, (N, F_IN), dtype=jnp.float32)

    # Random directed edges (no self loops, for a clean example)
    src = jax.random.randint(k_e, (E,), 0, N, dtype=jnp.int32)
    dst = (src + 1 + jax.random.randint(jax.random.fold_in(k_e, 1), (E,), 0, N - 1,
                                        dtype=jnp.int32)) % N
    edge_index = jnp.stack([src, dst], axis=0)          # [2, E]

    # Glorot-uniform weight (like GCNConv); non-zero bias to exercise the bias path
    limit = (6.0 / (F_IN + F_OUT)) ** 0.5
    weight = jax.random.uniform(k_w, (F_OUT, F_IN), jnp.float32, -limit, limit)
    bias = 0.1 * jax.random.normal(k_b, (F_OUT,), dtype=jnp.float32)

    ref = gcn_reference(x, edge_index, weight, bias)

    # Default (large, capped) tiles.
    out = jax.block_until_ready(gcn_forward(x, edge_index, weight, bias))
    # Small tiles -> (2, 2) grid: exercises k-axis accumulation + multiple row tiles.
    out_t = jax.block_until_ready(
        gcn_forward(x, edge_index, weight, bias, tile_m=128, tile_k=128))

    assert out.shape == (N, F_OUT)
    # bf16 streamed features -> ~3 decimal digits; tolerance loosened accordingly.
    assert jnp.allclose(out, ref, atol=2e-2, rtol=2e-2), float(jnp.abs(out - ref).max())
    assert jnp.allclose(out_t, ref, atol=2e-2, rtol=2e-2), float(jnp.abs(out_t - ref).max())

    # F_out < F_in path: features pre-transformed in the wrapper, A streamed against F_out-wide
    # bf16 features (no W operand / finalize matmul in the kernel).
    F_IN2, F_OUT2 = 8, 4
    x2 = jax.random.normal(k_x2, (N, F_IN2), dtype=jnp.float32)
    limit2 = (6.0 / (F_IN2 + F_OUT2)) ** 0.5
    weight2 = jax.random.uniform(k_w2, (F_OUT2, F_IN2), jnp.float32, -limit2, limit2)
    bias2 = 0.1 * jax.random.normal(k_b2, (F_OUT2,), dtype=jnp.float32)

    out2 = jax.block_until_ready(
        gcn_forward(x2, edge_index, weight2, bias2, tile_m=128, tile_k=128))
    ref2 = gcn_reference(x2, edge_index, weight2, bias2)
    assert jnp.allclose(out2, ref2, atol=2e-2, rtol=2e-2), float(jnp.abs(out2 - ref2).max())

    print("KERNEL_OK")
</pallas_src>

<mosaic_0001>
module attributes {stable_mosaic.version = 11 : i64} {
  func.func @_agg_transform_kernel(%arg0: i32, %arg1: i32, %arg2: memref<256x256xi8, #tpu.memory_space<vmem>>, %arg3: memref<256x4xbf16, #tpu.memory_space<vmem>>, %arg4: memref<256x1xf32, #tpu.memory_space<vmem>>, %arg5: memref<4x128xf32, #tpu.memory_space<vmem>>, %arg6: memref<1x128xf32, #tpu.memory_space<vmem>>, %arg7: memref<256x128xf32, #tpu.memory_space<vmem>>, %arg8: memref<256x4xf32, #tpu.memory_space<vmem>>) attributes {dimension_semantics = [#tpu.dimension_semantics<parallel>, #tpu.dimension_semantics<arbitrary>], iteration_bounds = array<i64: 1, 1>, scalar_prefetch = 0 : i64, scratch_operands = 1 : i64, tpu.core_type = #tpu.core_type<tc>, window_params = [{transform_indices = @transform_0, window_bounds = array<i64: 256, 256>}, {transform_indices = @transform_1, window_bounds = array<i64: 256, 4>}, {transform_indices = @transform_2, window_bounds = array<i64: 256, 1>}, {pipeline_mode = #tpu.pipeline_mode<synchronous>, transform_indices = @transform_3, window_bounds = array<i64: 4, 128>}, {pipeline_mode = #tpu.pipeline_mode<synchronous>, transform_indices = @transform_4, window_bounds = array<i64: 1, 128>}, {transform_indices = @transform_5, window_bounds = array<i64: 256, 128>}]} {
    %c0_i32 = arith.constant 0 : i32
    %0 = arith.cmpi eq, %arg1, %c0_i32 : i32
    %1 = arith.extui %0 : i1 to i32
    %c0_i32_0 = arith.constant 0 : i32
    %2 = arith.cmpi ne, %1, %c0_i32_0 : i32
    scf.if %2 {
      %cst_10 = arith.constant 0.000000e+00 : f32
      %13 = vector.broadcast %cst_10 : f32 to vector<256x4xf32>
      %c0_11 = arith.constant 0 : index
      %c0_12 = arith.constant 0 : index
      %14 = vector.load %arg8[%c0_11, %c0_12] : memref<256x4xf32, #tpu.memory_space<vmem>>, vector<256x4xf32>
      tpu.vector_store %arg8[%c0_11, %c0_12], %13 {strides = array<i32>} : memref<256x4xf32, #tpu.memory_space<vmem>>, vector<256x4xf32>,
    } else {
    }
    %c0 = arith.constant 0 : index
    %c0_1 = arith.constant 0 : index
    %3 = vector.load %arg8[%c0, %c0_1] : memref<256x4xf32, #tpu.memory_space<vmem>>, vector<256x4xf32>
    %c0_2 = arith.constant 0 : index
    %c0_3 = arith.constant 0 : index
    %4 = vector.load %arg2[%c0_2, %c0_3] : memref<256x256xi8, #tpu.memory_space<vmem>>, vector<256x256xi8>
    %5 = arith.sitofp %4 : vector<256x256xi8> to vector<256x256xbf16>
    %c0_4 = arith.constant 0 : index
    %c0_5 = arith.constant 0 : index
    %6 = vector.load %arg3[%c0_4, %c0_5] : memref<256x4xbf16, #tpu.memory_space<vmem>>, vector<256x4xbf16>
    %cst = arith.constant dense<0.000000e+00> : vector<256x4xf32>
    %7 = tpu.matmul %5, %6, %cst {dimension_numbers = #tpu.dot_dimension_numbers<[1], [0], [0], [1], [0, 0, 1, 1], [], []>} : vector<256x256xbf16>, vector<256x4xbf16>, vector<256x4xf32> -> vector<256x4xf32>
    %8 = arith.addf %3, %7 : vector<256x4xf32>
    %c0_6 = arith.constant 0 : index
    %c0_7 = arith.constant 0 : index
    %9 = vector.load %arg8[%c0_6, %c0_7] : memref<256x4xf32, #tpu.memory_space<vmem>>, vector<256x4xf32>
    tpu.vector_store %arg8[%c0_6, %c0_7], %8 {strides = array<i32>} : memref<256x4xf32, #tpu.memory_space<vmem>>, vector<256x4xf32>,
    %c0_i32_8 = arith.constant 0 : i32
    %10 = arith.cmpi eq, %arg1, %c0_i32_8 : i32
    %11 = arith.extui %10 : i1 to i32
    %c0_i32_9 = arith.constant 0 : i32
    %12 = arith.cmpi ne, %11, %c0_i32_9 : i32
    scf.if %12 {
      %c0_10 = arith.constant 0 : index
      %c0_11 = arith.constant 0 : index
      %13 = vector.load %arg8[%c0_10, %c0_11] : memref<256x4xf32, #tpu.memory_space<vmem>>, vector<256x4xf32>
      %c0_12 = arith.constant 0 : index
      %c0_13 = arith.constant 0 : index
      %14 = vector.load %arg5[%c0_12, %c0_13] : memref<4x128xf32, #tpu.memory_space<vmem>>, vector<4x128xf32>
      %cst_14 = arith.constant dense<0.000000e+00> : vector<256x128xf32>
      %15 = tpu.matmul %13, %14, %cst_14 {dimension_numbers = #tpu.dot_dimension_numbers<[1], [0], [0], [1], [0, 0, 1, 1], [], []>} : vector<256x4xf32>, vector<4x128xf32>, vector<256x128xf32> -> vector<256x128xf32>
      %c0_15 = arith.constant 0 : index
      %c0_16 = arith.constant 0 : index
      %16 = vector.load %arg4[%c0_15, %c0_16] : memref<256x1xf32, #tpu.memory_space<vmem>>, vector<256x1xf32>
      %17 = vector.broadcast %16 : vector<256x1xf32> to vector<256x128xf32>
      %18 = arith.mulf %17, %15 : vector<256x128xf32>
      %c0_17 = arith.constant 0 : index
      %c0_18 = arith.constant 0 : index
      %19 = vector.load %arg6[%c0_17, %c0_18] : memref<1x128xf32, #tpu.memory_space<vmem>>, vector<1x128xf32>
      %20 = vector.broadcast %19 : vector<1x128xf32> to vector<256x128xf32>
      %21 = arith.addf %18, %20 : vector<256x128xf32>
      %c0_19 = arith.constant 0 : index
      %c0_20 = arith.constant 0 : index
      %22 = vector.load %arg7[%c0_19, %c0_20] : memref<256x128xf32, #tpu.memory_space<vmem>>, vector<256x128xf32>
      tpu.vector_store %arg7[%c0_19, %c0_20], %21 {strides = array<i32>} : memref<256x128xf32, #tpu.memory_space<vmem>>, vector<256x128xf32>,
    } else {
    }
    return
  }
  func.func @transform_0(%arg0: i32, %arg1: i32) -> (i32, i32) {
    %c0_i32 = arith.constant 0 : i32
    return %arg0, %arg1 : i32, i32
  }
  func.func @transform_1(%arg0: i32, %arg1: i32) -> (i32, i32) {
    %c0_i32 = arith.constant 0 : i32
    %c0_i32_0 = arith.constant 0 : i32
    return %arg1, %c0_i32 : i32, i32
  }
  func.func @transform_2(%arg0: i32, %arg1: i32) -> (i32, i32) {
    %c0_i32 = arith.constant 0 : i32
    %c0_i32_0 = arith.constant 0 : i32
    return %arg0, %c0_i32 : i32, i32
  }
  func.func @transform_3(%arg0: i32, %arg1: i32) -> (i32, i32) {
    %c0_i32 = arith.constant 0 : i32
    %c0_i32_0 = arith.constant 0 : i32
    %c0_i32_1 = arith.constant 0 : i32
    return %c0_i32, %c0_i32_0 : i32, i32
  }
  func.func @transform_4(%arg0: i32, %arg1: i32) -> (i32, i32) {
    %c0_i32 = arith.constant 0 : i32
    %c0_i32_0 = arith.constant 0 : i32
    %c0_i32_1 = arith.constant 0 : i32
    return %c0_i32, %c0_i32_0 : i32, i32
  }
  func.func @transform_5(%arg0: i32, %arg1: i32) -> (i32, i32) {
    %c0_i32 = arith.constant 0 : i32
    %c0_i32_0 = arith.constant 0 : i32
    return %arg0, %c0_i32 : i32, i32
  }
}

</mosaic_0001>

<bundles_post_ra>
// kernel: tpu_custom_call.1
= control target key start
LH: loop header
LB: loop body
LE: loop exit
PB: predicated region body
PF: predicated region fallthrough
CT: control target
= control target key end

     0   :  { %s1819_s0 = inlined_call_operand.vmem [shape: s8[256,256], index: 0, kind: input, shape index: {}]   ;;  %s1820_s1 = inlined_call_operand.vmem [shape: bf16[256,4], index: 1, kind: input, shape index: {}]   ;;  %s1821_s2 = inlined_call_operand.vmem [shape: f32[256,1], index: 2, kind: input, shape index: {}]   ;;  %s1822_s3 = inlined_call_operand.vmem [shape: f32[4,128], index: 3, kind: input, shape index: {}]   ;;  %s1823_s4 = inlined_call_operand.vmem [shape: f32[1,128], index: 4, kind: input, shape index: {}]   ;;  %s1824_s5 = inlined_call_operand.hbm [shape: f32[256,128], index: 5, kind: output, shape index: {}]  }
   0x1   :  { %v1300_v0 = vld [vmem:[%s1820_s1 + $0x38] sm:$0xff]  ;;  %v1299_v2 = vld [vmem:[%s1820_s1 + $0x30] sm:$0xff]  ;;  %v1298_v4 = vld [vmem:[%s1820_s1 + $0x28] sm:$0xff] }
   0x2   :  { %v1308_v1 = vld [vmem:[%s1820_s1 + $0x78] sm:$0xff]  ;;  %394 = vmatpush.bf16.msra.mxu0 %v1300_v0  ;;  %v1307_v3 = vld [vmem:[%s1820_s1 + $0x70] sm:$0xff]  ;;  %1309 = vmatpush.bf16.msra.mxu3 %v1300_v0  ;;  %v1306_v5 = vld [vmem:[%s1820_s1 + $0x68] sm:$0xff] }
   0x3   :  { %483 = vmatpush.bf16.msra.mxu1 %v1308_v1 }
   0x6   :  { %395 = vmatpush.bf16.msra.mxu0 %v1299_v2 }
   0x7   :  { %484 = vmatpush.bf16.msra.mxu1 %v1307_v3 }
   0x8   :  { %10 = vsyncpa [#allocation4], 0  ;;  %1310 = vmatpush.bf16.msra.mxu3 %v1299_v2  ;;  %v1297_v6 = vld [vmem:[%s1820_s1 + $0x20] sm:$0xff]  ;;  %v1296_v8 = vld [vmem:[%s1820_s1 + $0x18] sm:$0xff]  ;;  %vm25_vm0 = vcmask 31744   ;;  %vm769_vm1 = vcmask 1043456  }
   0x9   :  { %v1305_v7 = vld [vmem:[%s1820_s1 + $0x60] sm:$0xff]  ;;  %v1304_v9 = vld [vmem:[%s1820_s1 + $0x58] sm:$0xff]  ;;  %v1295_v10 = vld [vmem:[%s1820_s1 + $0x10] sm:$0xff]  ;;  %s1184_s17 = sshll.u32 %s1824_s5, 4  ;;  %s1364_s18 = smov 128   ;;  %s1185_s17 = int_to_ptr.hbm [resolvable:$true] %s1184_s17 }
   0xa   :  { %396 = vmatpush.bf16.msra.mxu0 %v1298_v4  ;;  %v1303_v11 = vld [vmem:[%s1820_s1 + $0x50] sm:$0xff]  ;;  %v90_v12 = vld [vmem:[%s1819_s0] sm:$0xff]  ;;  %v91_v13 = vld [vmem:[%s1819_s0 + $0x8] sm:$0xff]  ;;  %s1365_s19 = smov 8  }
   0xb   :  { %485 = vmatpush.bf16.msra.mxu1 %v1306_v5  ;;  %v102_v14 = vld [vmem:[%s1819_s0 + $0x60] sm:$0xff]  ;;  %v106_v15 = vunpack.c.0.s8 %v90_v12  ;;  %v108_v16 = vunpack.c.1.s8 %v90_v12  ;;  %v107_v17 = vunpack.c.0.s8 %v91_v13  ;;  %v109_v18 = vunpack.c.1.s8 %v91_v13  ;;  %v1294_v19 = vld [vmem:[%s1820_s1 + $0x8] sm:$0xff]  ;;  %v92_v49 = vld [vmem:[%s1819_s0 + $0x10] sm:$0xff] }
   0xc   :  { %1311 = vmatpush.bf16.msra.mxu3 %v1298_v4  ;;  %v1302_v20 = vld [vmem:[%s1820_s1 + $0x48] sm:$0xff]  ;;  %v154_v21 = vunpack.c.0.s8 %v102_v14  ;;  %v156_v22 = vunpack.c.1.s8 %v102_v14  ;;  %v1293_v27 = vld [vmem:[%s1820_s1] sm:$0xff]  ;;  %v110_v34 = vunpack.c.2.s8 %v90_v12  ;;  %v112_v35 = vunpack.c.3.s8 %v90_v12  ;;  %v93_v50 = vld [vmem:[%s1819_s0 + $0x18] sm:$0xff] }
   0xd   :  { %v170_v23 = vcvt.s32.f32 %v106_v15  ;;  %v172_v24 = vcvt.s32.f32 %v108_v16  ;;  %v171_v25 = vcvt.s32.f32 %v107_v17  ;;  %v173_v26 = vcvt.s32.f32 %v109_v18  ;;  %v1301_v28 = vld [vmem:[%s1820_s1 + $0x40] sm:$0xff]  ;;  %v104_v51 = vld [vmem:[%s1819_s0 + $0x70] sm:$0xff] }
   0xe   :  { %397 = vmatpush.bf16.msra.mxu0 %v1297_v6  ;;  %v218_v29 = vcvt.s32.f32 %v154_v21  ;;  %v220_v30 = vcvt.s32.f32 %v156_v22  ;;  %v111_v36 = vunpack.c.2.s8 %v91_v13  ;;  %v113_v37 = vunpack.c.3.s8 %v91_v13  ;;  %v94_v18 = vld [vmem:[%s1819_s0 + $0x20] sm:$0xff] }
   0xf   :  { %486 = vmatpush.bf16.msra.mxu1 %v1305_v7  ;;  %v234_v31 = vpack.c.bf16 %v172_v24, %v170_v23  ;;  %v235_v32 = vpack.c.bf16 %v173_v26, %v171_v25  ;;  %v158_v38 = vunpack.c.2.s8 %v102_v14  ;;  %v160_v39 = vunpack.c.3.s8 %v102_v14 }
  0x10   :  { %1312 = vmatpush.bf16.msra.mxu3 %v1297_v6  ;;  %v258_v33 = vpack.c.bf16 %v220_v30, %v218_v29  ;;  %v174_v40 = vcvt.s32.f32 %v110_v34  ;;  %v176_v41 = vcvt.s32.f32 %v112_v35  ;;  %v175_v42 = vcvt.s32.f32 %v111_v36 }
  0x11   :  { %v177_v43 = vcvt.s32.f32 %v113_v37  ;;  %v222_v44 = vcvt.s32.f32 %v158_v38  ;;  %v224_v45 = vcvt.s32.f32 %v160_v39  ;;  %v114_v52 = vunpack.c.0.s8 %v92_v49 }
  0x12   :  { %398 = vmatpush.bf16.msra.mxu0 %v1296_v8  ;;  %v236_v46 = vpack.c.bf16 %v176_v41, %v174_v40  ;;  %v116_v53 = vunpack.c.1.s8 %v92_v49  ;;  %v115_v54 = vunpack.c.0.s8 %v93_v50  ;;  %v117_v55 = vunpack.c.1.s8 %v93_v50 }
  0x13   :  { %487 = vmatpush.bf16.msra.mxu1 %v1304_v9  ;;  %v237_v47 = vpack.c.bf16 %v177_v43, %v175_v42  ;;  %v260_v48 = vpack.c.bf16 %v224_v45, %v222_v44  ;;  %v162_v56 = vunpack.c.0.s8 %v104_v51  ;;  %v164_v57 = vunpack.c.1.s8 %v104_v51 }
  0x14   :  { %1313 = vmatpush.bf16.msra.mxu3 %v1296_v8  ;;  %v178_v58 = vcvt.s32.f32 %v114_v52  ;;  %v180_v59 = vcvt.s32.f32 %v116_v53  ;;  %v179_v60 = vcvt.s32.f32 %v115_v54  ;;  %v181_v61 = vcvt.s32.f32 %v117_v55  ;;  %v97_v52 = vld [vmem:[%s1819_s0 + $0x38] sm:$0xff] }
  0x15   :  { %v226_v62 = vcvt.s32.f32 %v162_v56  ;;  %v228_v63 = vcvt.s32.f32 %v164_v57  ;;  %v120_v4 = vunpack.c.3.s8 %v92_v49  ;;  %v121_v6 = vunpack.c.3.s8 %v93_v50  ;;  %v105_v53 = vld [vmem:[%s1819_s0 + $0x78] sm:$0xff] }
  0x16   :  { %399 = vmatpush.bf16.msra.mxu0 %v1295_v10  ;;  %v238_v0 = vpack.c.bf16 %v180_v59, %v178_v58  ;;  %v168_v8 = vunpack.c.3.s8 %v104_v51  ;;  %v122_v21 = vunpack.c.0.s8 %v94_v18  ;;  %v124_v22 = vunpack.c.1.s8 %v94_v18 }
  0x17   :  { %488 = vmatpush.bf16.msra.mxu1 %v1303_v11  ;;  %v262_v2 = vpack.c.bf16 %v228_v63, %v226_v62  ;;  %v185_v12 = vcvt.s32.f32 %v121_v6  ;;  %v126_v36 = vunpack.c.2.s8 %v94_v18  ;;  %v128_v37 = vunpack.c.3.s8 %v94_v18 }
  0x18   :  { %1314 = vmatpush.bf16.msra.mxu3 %v1295_v10  ;;  %v184_v10 = vcvt.s32.f32 %v120_v4  ;;  %v232_v14 = vcvt.s32.f32 %v168_v8  ;;  %v131_v56 = vunpack.c.0.s8 %v97_v52  ;;  %v133_v57 = vunpack.c.1.s8 %v97_v52 }
  0x19   :  { %v190_v42 = vcvt.s32.f32 %v126_v36  ;;  %v192_v43 = vcvt.s32.f32 %v128_v37  ;;  %v163_v58 = vunpack.c.0.s8 %v105_v53  ;;  %v165_v59 = vunpack.c.1.s8 %v105_v53 }
  0x1a   :  { %400 = vmatpush.bf16.msra.mxu0 %v1294_v19  ;;  %v195_v62 = vcvt.s32.f32 %v131_v56  ;;  %v197_v63 = vcvt.s32.f32 %v133_v57  ;;  %v135_v8 = vunpack.c.2.s8 %v97_v52  ;;  %v888_v57 = vld [vmem:[%s1821_s2 + $0x10] sm:$0xff] }
  0x1b   :  { %489 = vmatpush.bf16.msra.mxu1 %v1302_v20 }
  0x1c   :  { %1315 = vmatpush.bf16.msra.mxu3 %v1294_v19  ;;  %v95_v19 = vld [vmem:[%s1819_s0 + $0x28] sm:$0xff]  ;;  %v247_v4 = vpack.c.bf16 %v197_v63, %v195_v62 }
  0x1d   :  { %v123_v23 = vunpack.c.0.s8 %v95_v19  ;;  %v125_v24 = vunpack.c.1.s8 %v95_v19  ;;  %v127_v38 = vunpack.c.2.s8 %v95_v19  ;;  %v129_v39 = vunpack.c.3.s8 %v95_v19 }
  0x1e   :  { %401 = vmatpush.bf16.msra.mxu0 %v1293_v27 }
  0x1f   :  { %490 = vmatpush.bf16.msra.mxu1 %v1301_v28  ;;  %v187_v29 = vcvt.s32.f32 %v123_v23  ;;  %v189_v30 = vcvt.s32.f32 %v125_v24  ;;  %v191_v44 = vcvt.s32.f32 %v127_v38  ;;  %v193_v45 = vcvt.s32.f32 %v129_v39  ;;  %v99_v23 = vld [vmem:[%s1819_s0 + $0x48] sm:$0xff] }
  0x20   :  { %1316 = vmatpush.bf16.msra.mxu3 %v1293_v27  ;;  %v186_v27 = vcvt.s32.f32 %v122_v21 }
  0x21   :  { %402 = vmatmul.bf16.vlgmr.msra.gmra.mxu0 %v234_v31  ;;  %v243_v34 = vpack.c.bf16 %v189_v30, %v187_v29 }
  0x22   :  { %491 = vmatmul.bf16.vlgmr.msra.gmra.mxu1 %v235_v32 }
  0x23   :  { %462 = vmatmul.bf16.vlgmr.msra.gmra.mxu3 %v258_v33 }
  0x24   :  { %1317 = vmatpush.bf16.msrb.mxu3 %v1308_v1  ;;  %v239_v1 = vpack.c.bf16 %v181_v61, %v179_v60 }
  0x28   :  { %1318 = vmatpush.bf16.msrb.mxu3 %v1307_v3  ;;  %v118_v3 = vunpack.c.2.s8 %v92_v49  ;;  %v245_v49 = vpack.c.bf16 %v193_v45, %v191_v44  ;;  %v143_v45 = vunpack.c.2.s8 %v99_v23 }
  0x2c   :  { %1319 = vmatpush.bf16.msrb.mxu3 %v1306_v5  ;;  %v119_v5 = vunpack.c.2.s8 %v93_v50 }
  0x30   :  { %1320 = vmatpush.bf16.msrb.mxu3 %v1305_v7  ;;  %v166_v7 = vunpack.c.2.s8 %v104_v51  ;;  %v96_v51 = vld [vmem:[%s1819_s0 + $0x30] sm:$0xff] }
  0x31   :  { %407 = vmatmul.bf16.gmra.mxu0 %v236_v46  ;;  %v130_v54 = vunpack.c.0.s8 %v96_v51  ;;  %v132_v55 = vunpack.c.1.s8 %v96_v51  ;;  %v134_v6 = vunpack.c.2.s8 %v96_v51 }
  0x32   :  { %496 = vmatmul.bf16.gmra.mxu1 %v237_v47  ;;  %v230_v13 = vcvt.s32.f32 %v166_v7  ;;  %v136_v7 = vunpack.c.3.s8 %v96_v51 }
  0x33   :  { %467 = vmatmul.bf16.gmra.mxu3 %v260_v48  ;;  %v244_v48 = vpack.c.bf16 %v192_v43, %v190_v42  ;;  %v194_v60 = vcvt.s32.f32 %v130_v54  ;;  %v196_v61 = vcvt.s32.f32 %v132_v55  ;;  %v207_v54 = vcvt.s32.f32 %v143_v45 }
  0x34   :  { %1321 = vmatpush.bf16.msrb.mxu3 %v1304_v9  ;;  %v182_v9 = vcvt.s32.f32 %v118_v3  ;;  %v264_v17 = vpack.c.bf16 %v232_v14, %v230_v13  ;;  %v200_v13 = vcvt.s32.f32 %v136_v7  ;;  %v199_v14 = vcvt.s32.f32 %v135_v8 }
  0x35   :  { %v246_v3 = vpack.c.bf16 %v196_v61, %v194_v60 }
  0x36   :  { %v240_v15 = vpack.c.bf16 %v184_v10, %v182_v9  ;;  %v137_v9 = vunpack.c.3.s8 %v97_v52  ;;  %v167_v10 = vunpack.c.2.s8 %v105_v53 }
  0x38   :  { %1322 = vmatpush.bf16.msrb.mxu3 %v1303_v11  ;;  %v183_v11 = vcvt.s32.f32 %v119_v5 }
  0x3a   :  { %v241_v16 = vpack.c.bf16 %v185_v12, %v183_v11  ;;  %v169_v11 = vunpack.c.3.s8 %v105_v53  ;;  %v198_v12 = vcvt.s32.f32 %v134_v6 }
  0x3c   :  { %1323 = vmatpush.bf16.msrb.mxu3 %v1302_v20  ;;  %v103_v20 = vld [vmem:[%s1819_s0 + $0x68] sm:$0xff]  ;;  %v233_v18 = vcvt.s32.f32 %v169_v11  ;;  %v248_v19 = vpack.c.bf16 %v200_v13, %v198_v12 }
  0x3d   :  { %v155_v25 = vunpack.c.0.s8 %v103_v20  ;;  %v157_v26 = vunpack.c.1.s8 %v103_v20  ;;  %v159_v40 = vunpack.c.2.s8 %v103_v20  ;;  %v161_v41 = vunpack.c.3.s8 %v103_v20 }
  0x3f   :  { %v219_v31 = vcvt.s32.f32 %v155_v25  ;;  %v221_v32 = vcvt.s32.f32 %v157_v26  ;;  %v223_v46 = vcvt.s32.f32 %v159_v40  ;;  %v225_v47 = vcvt.s32.f32 %v161_v41  ;;  %v887_v41 = vld [vmem:[%s1821_s2 + $0x8] sm:$0xff] }
  0x40   :  { %1324 = vmatpush.bf16.msrb.mxu3 %v1301_v28  ;;  %v188_v28 = vcvt.s32.f32 %v124_v22  ;;  %v98_v22 = vld [vmem:[%s1819_s0 + $0x40] sm:$0xff]  ;;  %v139_v26 = vunpack.c.0.s8 %v99_v23 }
  0x41   :  { %412 = vmatmul.bf16.gmra.mxu0 %v238_v0  ;;  %v259_v35 = vpack.c.bf16 %v221_v32, %v219_v31  ;;  %v261_v50 = vpack.c.bf16 %v225_v47, %v223_v46  ;;  %v1361_v0 = vmov 0.0   ;;  %v138_v24 = vunpack.c.0.s8 %v98_v22 }
  0x42   :  { %501 = vmatmul.bf16.gmra.mxu1 %v239_v1  ;;  %v242_v33 = vpack.c.bf16 %v188_v28, %v186_v27  ;;  %26 = vst.msk [vmem:[#allocation2] sm:$0xff] %vm25_vm0, %v1361_v0  ;;  %v227_v1 = vcvt.s32.f32 %v163_v58  ;;  %v140_v25 = vunpack.c.1.s8 %v98_v22  ;;  %v141_v27 = vunpack.c.1.s8 %v99_v23 }
  0x43   :  { %472 = vmatmul.bf16.gmra.mxu3 %v262_v2  ;;  %v229_v2 = vcvt.s32.f32 %v165_v59  ;;  %27 = vst.msk [vmem:[#allocation2 + $0x8] sm:$0xff] %vm25_vm0, %v1361_v0  ;;  %v202_v28 = vcvt.s32.f32 %v138_v24  ;;  %v203_v30 = vcvt.s32.f32 %v139_v26  ;;  %v1362_v32 = vmov 0  }
  0x44   :  { %28 = vst.msk [vmem:[#allocation2 + $0x10] sm:$0xff] %vm25_vm0, %v1361_v0  ;;  %v204_v29 = vcvt.s32.f32 %v140_v25  ;;  %v205_v31 = vcvt.s32.f32 %v141_v27  ;;  %1331 = vset.pattern.permute.xlu0 %v1362_v32  ;;  %1332 = vset.pattern.permute.xlu1 %v1362_v32  ;;  %v142_v42 = vunpack.c.2.s8 %v98_v22  ;;  %v144_v44 = vunpack.c.3.s8 %v98_v22 }
  0x45   :  { %29 = vst.msk [vmem:[#allocation2 + $0x18] sm:$0xff] %vm25_vm0, %v1361_v0  ;;  %v263_v5 = vpack.c.bf16 %v229_v2, %v227_v1  ;;  %1333 = vset.pattern.permute.xlu2 %v1362_v32  ;;  %v145_v46 = vunpack.c.3.s8 %v99_v23  ;;  %930 = vperm.xlu1 %1332, %v888_v57   ;;  %v100_v2 = vld [vmem:[%s1819_s0 + $0x50] sm:$0xff]  ;;  %v893_v57 = vld [vmem:[%s1821_s2 + $0x38] sm:$0xff] }
  0x46   :  { %30 = vst.msk [vmem:[#allocation2 + $0x20] sm:$0xff] %vm25_vm0, %v1361_v0  ;;  %v206_v51 = vcvt.s32.f32 %v142_v42  ;;  %v208_v53 = vcvt.s32.f32 %v144_v44  ;;  %v146_v6 = vunpack.c.0.s8 %v100_v2  ;;  %v148_v8 = vunpack.c.1.s8 %v100_v2 }
  0x47   :  { %31 = vst.msk [vmem:[#allocation2 + $0x28] sm:$0xff] %vm25_vm0, %v1361_v0  ;;  %v209_v55 = vcvt.s32.f32 %v145_v46  ;;  %v152_v32 = vunpack.c.3.s8 %v100_v2  ;;  %v892_v46 = vld [vmem:[%s1821_s2 + $0x30] sm:$0xff] }
  0x48   :  { %32 = vst.msk [vmem:[#allocation2 + $0x30] sm:$0xff] %vm25_vm0, %v1361_v0  ;;  %v252_v59 = vpack.c.bf16 %v208_v53, %v206_v51 }
  0x49   :  { %33 = vst.msk [vmem:[#allocation2 + $0x38] sm:$0xff] %vm25_vm0, %v1361_v0  ;;  %v58_v37 = vld [vmem:[#allocation2] sm:$0xff]  ;;  %v253_v60 = vpack.c.bf16 %v209_v55, %v207_v54 }
  0x4a   :  { %34 = vst.msk [vmem:[#allocation2 + $0x40] sm:$0xff] %vm25_vm0, %v1361_v0 }
  0x4b   :  { %35 = vst.msk [vmem:[#allocation2 + $0x48] sm:$0xff] %vm25_vm0, %v1361_v0  ;;  %v60_v62 = vld [vmem:[#allocation2 + $0x10] sm:$0xff] }
  0x4c   :  { %36 = vst.msk [vmem:[#allocation2 + $0x50] sm:$0xff] %vm25_vm0, %v1361_v0  ;;  %v61_v12 = vld [vmem:[#allocation2 + $0x18] sm:$0xff] }
  0x4d   :  { %37 = vst.msk [vmem:[#allocation2 + $0x58] sm:$0xff] %vm25_vm0, %v1361_v0  ;;  %v62_v25 = vld [vmem:[#allocation2 + $0x20] sm:$0xff] }
  0x4e   :  { %38 = vst.msk [vmem:[#allocation2 + $0x60] sm:$0xff] %vm25_vm0, %v1361_v0 }
  0x4f   :  { %39 = vst.msk [vmem:[#allocation2 + $0x68] sm:$0xff] %vm25_vm0, %v1361_v0  ;;  %v64_v51 = vld [vmem:[#allocation2 + $0x30] sm:$0xff] }
  0x50   :  { %40 = vst.msk [vmem:[#allocation2 + $0x70] sm:$0xff] %vm25_vm0, %v1361_v0 }
  0x51   :  { %417 = vmatmul.bf16.gmra.mxu0 %v240_v15  ;;  %41 = vst.msk [vmem:[#allocation2 + $0x78] sm:$0xff] %vm25_vm0, %v1361_v0  ;;  %v201_v15 = vcvt.s32.f32 %v137_v9 }
  0x52   :  { %506 = vmatmul.bf16.gmra.mxu1 %v241_v16  ;;  %42 = vst.msk [vmem:[#allocation2 + $0x80] sm:$0xff] %vm25_vm0, %v1361_v0  ;;  %v672_v16 = vld [vmem:[%s1822_s3] sm:$0xf] }
  0x53   :  { %477 = vmatmul.bf16.gmra.mxu3 %v264_v17  ;;  %v231_v17 = vcvt.s32.f32 %v167_v10  ;;  %43 = vst.msk [vmem:[#allocation2 + $0x88] sm:$0xff] %vm25_vm0, %v1361_v0  ;;  %1260 = vmatpush.msk.msra.mxu2 %vm769_vm1, %v672_v16  ;;  %v249_v20 = vpack.c.bf16 %v201_v15, %v199_v14  ;;  %v210_v15 = vcvt.s32.f32 %v146_v6 }
  0x54   :  { %1325 = vmatpush.msk.msra.mxu3 %vm769_vm1, %v672_v16  ;;  %44 = vst.msk [vmem:[#allocation2 + $0x90] sm:$0xff] %vm25_vm0, %v1361_v0 }
  0x55   :  { %45 = vst.msk [vmem:[#allocation2 + $0x98] sm:$0xff] %vm25_vm0, %v1361_v0  ;;  %v265_v21 = vpack.c.bf16 %v233_v18, %v231_v17  ;;  %v212_v17 = vcvt.s32.f32 %v148_v8  ;;  %v66_v8 = vld [vmem:[#allocation2 + $0x40] sm:$0xff] }
  0x56   :  { %46 = vst.msk [vmem:[#allocation2 + $0xa0] sm:$0xff] %vm25_vm0, %v1361_v0 }
  0x57   :  { %47 = vst.msk [vmem:[#allocation2 + $0xa8] sm:$0xff] %vm25_vm0, %v1361_v0  ;;  %v254_v22 = vpack.c.bf16 %v212_v17, %v210_v15 }
  0x58   :  { %48 = vst.msk [vmem:[#allocation2 + $0xb0] sm:$0xff] %vm25_vm0, %v1361_v0 }
  0x59   :  { %49 = vst.msk [vmem:[#allocation2 + $0xb8] sm:$0xff] %vm25_vm0, %v1361_v0 }
  0x5a   :  { %50 = vst.msk [vmem:[#allocation2 + $0xc0] sm:$0xff] %vm25_vm0, %v1361_v0 }
  0x5b   :  { %51 = vst.msk [vmem:[#allocation2 + $0xc8] sm:$0xff] %vm25_vm0, %v1361_v0 }
  0x5c   :  { %52 = vst.msk [vmem:[#allocation2 + $0xd0] sm:$0xff] %vm25_vm0, %v1361_v0 }
  0x5d   :  { %53 = vst.msk [vmem:[#allocation2 + $0xd8] sm:$0xff] %vm25_vm0, %v1361_v0 }
  0x5e   :  { %54 = vst.msk [vmem:[#allocation2 + $0xe0] sm:$0xff] %vm25_vm0, %v1361_v0 }
  0x5f   :  { %55 = vst.msk [vmem:[#allocation2 + $0xe8] sm:$0xff] %vm25_vm0, %v1361_v0 }
  0x60   :  { %56 = vst.msk [vmem:[#allocation2 + $0xf0] sm:$0xff] %vm25_vm0, %v1361_v0 }
  0x61   :  { %422 = vmatmul.bf16.gmra.mxu0 %v242_v33  ;;  %57 = vst.msk [vmem:[#allocation2 + $0xf8] sm:$0xff] %vm25_vm0, %v1361_v0  ;;  %v886_v33 = vld [vmem:[%s1821_s2] sm:$0xff] }
  0x62   :  { %511 = vmatmul.bf16.gmra.mxu1 %v243_v34  ;;  %920 = vperm.xlu0 %1331, %v886_v33   ;;  %v250_v34 = vpack.c.bf16 %v204_v29, %v202_v28  ;;  %v82_v15 = vld [vmem:[#allocation2 + $0xc0] sm:$0xff] }
  0x63   :  { %551 = vmatmul.bf16.vlgmr.msrb.gmra.mxu3 %v259_v35  ;;  %v251_v35 = vpack.c.bf16 %v205_v31, %v203_v30  ;;  %v150_v30 = vunpack.c.2.s8 %v100_v2 }
  0x6a   :  { %925 = vperm.xlu0 %1331, %v887_v41   ;;  %v216_v41 = vcvt.s32.f32 %v152_v32 }
  0x71   :  { %427 = vmatmul.bf16.gmra.mxu0 %v244_v48  ;;  %v59_v48 = vld [vmem:[#allocation2 + $0x8] sm:$0xff] }
  0x72   :  { %516 = vmatmul.bf16.gmra.mxu1 %v245_v49  ;;  %950 = vperm.xlu0 %1331, %v892_v46  }
  0x73   :  { %556 = vmatmul.bf16.gmra.mxu3 %v261_v50 }
  0x81   :  { %432 = vmatmul.bf16.gmra.mxu0 %v246_v3 }
  0x82   :  { %521 = vmatmul.bf16.gmra.mxu1 %v247_v4  ;;  %v101_v4 = vld [vmem:[%s1819_s0 + $0x58] sm:$0xff] }
  0x83   :  { %561 = vmatmul.bf16.gmra.mxu3 %v263_v5  ;;  %v889_v5 = vld [vmem:[%s1821_s2 + $0x18] sm:$0xff]  ;;  %v147_v9 = vunpack.c.0.s8 %v101_v4  ;;  %v149_v10 = vunpack.c.1.s8 %v101_v4  ;;  %v151_v33 = vunpack.c.2.s8 %v101_v4 }
  0x84   :  { %935 = vperm.xlu1 %1332, %v889_v5  }
  0x85   :  { %v211_v18 = vcvt.s32.f32 %v147_v9  ;;  %v215_v42 = vcvt.s32.f32 %v151_v33 }
  0x8c   :  { %955 = vperm.xlu1 %1332, %v893_v57   ;;  %v70_v57 = vld [vmem:[#allocation2 + $0x60] sm:$0xff] }
  0x91   :  { %437 = vmatmul.bf16.gmra.mxu0 %v248_v19  ;;  %v213_v19 = vcvt.s32.f32 %v149_v10 }
  0x92   :  { %526 = vmatmul.bf16.gmra.mxu1 %v249_v20 }
  0x93   :  { %566 = vmatmul.bf16.gmra.mxu3 %v265_v21  ;;  %v255_v23 = vpack.c.bf16 %v213_v19, %v211_v18  ;;  %v67_v18 = vld [vmem:[#allocation2 + $0x48] sm:$0xff] }
  0x9e   :  { %v403_v36 = vpop.f32.mrf.mxu0 }
  0x9f   :  { %v492_v38 = vpop.f32.mrf.mxu1 }
  0xa0   :  { %v493_v39 = vadd.f32 %v492_v38, %v403_v36  ;;  %v63_v36 = vld [vmem:[#allocation2 + $0x28] sm:$0xff] }
  0xa1   :  { %442 = vmatmul.bf16.gmra.mxu0 %v250_v34  ;;  %v153_v34 = vunpack.c.3.s8 %v101_v4  ;;  %v898_v4 = vld [vmem:[%s1821_s2 + $0x60] sm:$0xff] }
  0xa2   :  { %v572_v40 = vadd.f32 %v493_v39, %v58_v37  ;;  %531 = vmatmul.bf16.gmra.mxu1 %v251_v35  ;;  %v214_v39 = vcvt.s32.f32 %v150_v30  ;;  %v68_v30 = vld [vmem:[#allocation2 + $0x50] sm:$0xff] }
  0xa3   :  { %v217_v44 = vcvt.s32.f32 %v153_v34 }
  0xa4   :  { %605 = vst.msk [vmem:[#allocation2] sm:$0xff] %vm25_vm0, %v572_v40 }
  0xa6   :  { %v1560_v43 = vpop.f32.mrf.mxu3  ;;  %v405_v47 = vpop.f32.mrf.mxu0 }
  0xa7   :  { %v494_v49 = vpop.f32.mrf.mxu1 }
  0xa8   :  { %v495_v50 = vadd.f32 %v494_v49, %v405_v47  ;;  %v257_v49 = vpack.c.bf16 %v217_v44, %v215_v42  ;;  %v69_v44 = vld [vmem:[#allocation2 + $0x58] sm:$0xff] }
  0xaa   :  { %v573_v52 = vadd.f32 %v495_v50, %v59_v48  ;;  %v256_v48 = vpack.c.bf16 %v216_v41, %v214_v39  ;;  %v902_v39 = vld [vmem:[%s1821_s2 + $0x80] sm:$0xff] }
  0xab   :  { %v640_v56 = vld [vmem:[#allocation2] sm:$0xff] }
  0xac   :  { %606 = vst.msk [vmem:[#allocation2 + $0x8] sm:$0xff] %vm25_vm0, %v573_v52  ;;  %1261 = vmatmul.msk.f32.vlgmr.msra.gmra.mxu2 %vm25_vm0, %v640_v56  ;;  %v890_v56 = vld [vmem:[%s1821_s2 + $0x20] sm:$0xff] }
  0xad   :  { %940 = vperm.xlu2 %1333, %v890_v56  }
  0xae   :  { %v1567_v58 = vpop.f32.mrf.mxu3  ;;  %v408_v61 = vpop.f32.mrf.mxu0 }
  0xaf   :  { %v497_v63 = vpop.f32.mrf.mxu1 }
  0xb0   :  { %v498_v0 = vadd.f32 %v497_v63, %v408_v61 }
  0xb1   :  { %447 = vmatmul.bf16.gmra.mxu0 %v252_v59  ;;  %v895_v59 = vld [vmem:[%s1821_s2 + $0x48] sm:$0xff] }
  0xb2   :  { %v574_v1 = vadd.f32 %v498_v0, %v60_v62  ;;  %536 = vmatmul.bf16.gmra.mxu1 %v253_v60  ;;  %965 = vperm.xlu0 %1331, %v895_v59   ;;  %v65_v62 = vld [vmem:[#allocation2 + $0x38] sm:$0xff] }
  0xb3   :  { %v641_v3 = vld [vmem:[#allocation2 + $0x8] sm:$0xff] }
  0xb4   :  { %607 = vst.msk [vmem:[#allocation2 + $0x10] sm:$0xff] %vm25_vm0, %v574_v1  ;;  %1262 = vmatmul.msk.f32.gmra.mxu2 %vm25_vm0, %v641_v3  ;;  %v891_v3 = vld [vmem:[%s1821_s2 + $0x28] sm:$0xff] }
  0xb5   :  { %945 = vperm.xlu2 %1333, %v891_v3   ;;  %v908_v3 = vld [vmem:[%s1821_s2 + $0xb0] sm:$0xff] }
  0xb6   :  { %v1580_v7 = vpop.f32.mrf.mxu3  ;;  %v410_v11 = vpop.f32.mrf.mxu0 }
  0xb7   :  { %v499_v13 = vpop.f32.mrf.mxu1 }
  0xb8   :  { %v500_v14 = vadd.f32 %v499_v13, %v410_v11  ;;  %v896_v13 = vld [vmem:[%s1821_s2 + $0x50] sm:$0xff] }
  0xb9   :  { %970 = vperm.xlu1 %1332, %v896_v13  }
  0xba   :  { %v575_v16 = vadd.f32 %v500_v14, %v61_v12  ;;  %980 = vperm.xlu0 %1331, %v898_v4   ;;  %v901_v14 = vld [vmem:[%s1821_s2 + $0x78] sm:$0xff]  ;;  %v86_v4 = vld [vmem:[#allocation2 + $0xe0] sm:$0xff] }
  0xbb   :  { %v642_v20 = vld [vmem:[#allocation2 + $0x10] sm:$0xff] }
  0xbc   :  { %608 = vst.msk [vmem:[#allocation2 + $0x18] sm:$0xff] %vm25_vm0, %v575_v16  ;;  %1263 = vmatmul.msk.f32.gmra.mxu2 %vm25_vm0, %v642_v20 }
  0xbe   :  { %v1584_v21 = vpop.f32.mrf.mxu3  ;;  %v413_v24 = vpop.f32.mrf.mxu0 }
  0xbf   :  { %v502_v26 = vpop.f32.mrf.mxu1 }
  0xc0   :  { %v503_v27 = vadd.f32 %v502_v26, %v413_v24  ;;  %v899_v26 = vld [vmem:[%s1821_s2 + $0x68] sm:$0xff] }
  0xc1   :  { %452 = vmatmul.bf16.gmra.mxu0 %v254_v22  ;;  %985 = vperm.xlu1 %1332, %v899_v26  }
  0xc2   :  { %v576_v28 = vadd.f32 %v503_v27, %v62_v25  ;;  %541 = vmatmul.bf16.gmra.mxu1 %v255_v23  ;;  %995 = vperm.xlu0 %1331, %v901_v14   ;;  %v904_v27 = vld [vmem:[%s1821_s2 + $0x90] sm:$0xff] }
  0xc3   :  { %v643_v29 = vld [vmem:[#allocation2 + $0x18] sm:$0xff] }
  0xc4   :  { %609 = vst.msk [vmem:[#allocation2 + $0x20] sm:$0xff] %vm25_vm0, %v576_v28  ;;  %1264 = vmatmul.msk.f32.gmra.mxu2 %vm25_vm0, %v643_v29 }
  0xc6   :  { %v1588_v31 = vpop.f32.mrf.mxu3  ;;  %v415_v35 = vpop.f32.mrf.mxu0 }
  0xc7   :  { %v504_v37 = vpop.f32.mrf.mxu1 }
  0xc8   :  { %v505_v38 = vadd.f32 %v504_v37, %v415_v35 }
  0xc9   :  { %1000 = vperm.xlu1 %1332, %v902_v39  }
  0xca   :  { %v577_v40 = vadd.f32 %v505_v38, %v63_v36  ;;  %1010 = vperm.xlu0 %1331, %v904_v27   ;;  %v894_v38 = vld [vmem:[%s1821_s2 + $0x40] sm:$0xff] }
  0xcb   :  { %v644_v45 = vld [vmem:[#allocation2 + $0x20] sm:$0xff]  ;;  %960 = vperm.xlu2 %1333, %v894_v38  }
  0xcc   :  { %610 = vst.msk [vmem:[#allocation2 + $0x28] sm:$0xff] %vm25_vm0, %v577_v40  ;;  %1265 = vmatmul.msk.f32.gmra.mxu2 %vm25_vm0, %v644_v45  ;;  %v84_v40 = vld [vmem:[#allocation2 + $0xd0] sm:$0xff] }
  0xce   :  { %v1595_v47 = vpop.f32.mrf.mxu3  ;;  %v418_v50 = vpop.f32.mrf.mxu0 }
  0xcf   :  { %v507_v52 = vpop.f32.mrf.mxu1 }
  0xd0   :  { %v508_v53 = vadd.f32 %v507_v52, %v418_v50  ;;  %v897_v52 = vld [vmem:[%s1821_s2 + $0x58] sm:$0xff] }
  0xd1   :  { %457 = vmatmul.bf16.gmra.mxu0 %v256_v48 }
  0xd2   :  { %v578_v54 = vadd.f32 %v508_v53, %v64_v51  ;;  %546 = vmatmul.bf16.gmra.mxu1 %v257_v49  ;;  %v905_v53 = vld [vmem:[%s1821_s2 + $0x98] sm:$0xff] }
  0xd3   :  { %v645_v55 = vld [vmem:[#allocation2 + $0x28] sm:$0xff]  ;;  %975 = vperm.xlu2 %1333, %v897_v52   ;;  %1015 = vperm.xlu1 %1332, %v905_v53  }
  0xd4   :  { %611 = vst.msk [vmem:[#allocation2 + $0x30] sm:$0xff] %vm25_vm0, %v578_v54  ;;  %1266 = vmatmul.msk.f32.gmra.mxu2 %vm25_vm0, %v645_v55  ;;  %v85_v54 = vld [vmem:[#allocation2 + $0xd8] sm:$0xff] }
  0xd6   :  { %v1608_v60 = vpop.f32.mrf.mxu3  ;;  %v420_v61 = vpop.f32.mrf.mxu0 }
  0xd7   :  { %v509_v63 = vpop.f32.mrf.mxu1 }
  0xd8   :  { %v510_v0 = vadd.f32 %v509_v63, %v420_v61 }
  0xda   :  { %v579_v1 = vadd.f32 %v510_v0, %v65_v62 }
  0xdb   :  { %v646_v2 = vld [vmem:[#allocation2 + $0x30] sm:$0xff]  ;;  %1030 = vperm.xlu1 %1332, %v908_v3  }
  0xdc   :  { %612 = vst.msk [vmem:[#allocation2 + $0x38] sm:$0xff] %vm25_vm0, %v579_v1  ;;  %1267 = vmatmul.msk.f32.gmra.mxu2 %vm25_vm0, %v646_v2  ;;  %v900_v2 = vld [vmem:[%s1821_s2 + $0x70] sm:$0xff] }
  0xdd   :  { %990 = vperm.xlu2 %1333, %v900_v2   ;;  %v76_v3 = vld [vmem:[#allocation2 + $0x90] sm:$0xff] }
  0xde   :  { %v1618_v5 = vpop.f32.mrf.mxu3  ;;  %v423_v6 = vpop.f32.mrf.mxu0 }
  0xdf   :  { %v512_v9 = vpop.f32.mrf.mxu1 }
  0xe0   :  { %v513_v10 = vadd.f32 %v512_v9, %v423_v6  ;;  %v71_v9 = vld [vmem:[#allocation2 + $0x68] sm:$0xff] }
  0xe2   :  { %v580_v11 = vadd.f32 %v513_v10, %v66_v8 }
  0xe3   :  { %v647_v12 = vld [vmem:[#allocation2 + $0x38] sm:$0xff] }
  0xe4   :  { %613 = vst.msk [vmem:[#allocation2 + $0x40] sm:$0xff] %vm25_vm0, %v580_v11  ;;  %1268 = vmatmul.msk.f32.gmra.mxu2 %vm25_vm0, %v647_v12 }
  0xe6   :  { %v552_v16 = vpop.f32.mrf.mxu3  ;;  %v425_v17 = vpop.f32.mrf.mxu0 }
  0xe7   :  { %v514_v19 = vpop.f32.mrf.mxu1  ;;  %v553_v20 = vadd.f32 %v552_v16, %v1560_v43  ;;  %v83_v43 = vld [vmem:[#allocation2 + $0xc8] sm:$0xff] }
  0xe8   :  { %v515_v22 = vadd.f32 %v514_v19, %v425_v17  ;;  %v903_v17 = vld [vmem:[%s1821_s2 + $0x88] sm:$0xff] }
  0xe9   :  { %v596_v23 = vadd.f32 %v553_v20, %v82_v15  ;;  %1005 = vperm.xlu2 %1333, %v903_v17  }
  0xea   :  { %v581_v24 = vadd.f32 %v515_v22, %v67_v18  ;;  %v87_v18 = vld [vmem:[#allocation2 + $0xe8] sm:$0xff]  ;;  %v72_v22 = vld [vmem:[#allocation2 + $0x70] sm:$0xff] }
  0xeb   :  { %629 = vst.msk [vmem:[#allocation2 + $0xc0] sm:$0xff] %vm25_vm0, %v596_v23  ;;  %v648_v25 = vld [vmem:[#allocation2 + $0x40] sm:$0xff] }
  0xec   :  { %614 = vst.msk [vmem:[#allocation2 + $0x48] sm:$0xff] %vm25_vm0, %v581_v24  ;;  %1269 = vmatmul.msk.f32.gmra.mxu2 %vm25_vm0, %v648_v25 }
  0xee   :  { %v554_v28 = vpop.f32.mrf.mxu3  ;;  %v428_v29 = vpop.f32.mrf.mxu0 }
  0xef   :  { %v517_v32 = vpop.f32.mrf.mxu1  ;;  %v555_v33 = vadd.f32 %v554_v28, %v1567_v58  ;;  %v907_v58 = vld [vmem:[%s1821_s2 + $0xa8] sm:$0xff] }
  0xf0   :  { %v518_v34 = vadd.f32 %v517_v32, %v428_v29  ;;  %1025 = vperm.xlu0 %1331, %v907_v58   ;;  %v906_v29 = vld [vmem:[%s1821_s2 + $0xa0] sm:$0xff] }
  0xf1   :  { %v597_v35 = vadd.f32 %v555_v33, %v83_v43  ;;  %1020 = vperm.xlu2 %1333, %v906_v29  }
  0xf2   :  { %v582_v36 = vadd.f32 %v518_v34, %v68_v30  ;;  %v88_v30 = vld [vmem:[#allocation2 + $0xf0] sm:$0xff]  ;;  %v73_v34 = vld [vmem:[#allocation2 + $0x78] sm:$0xff] }
  0xf3   :  { %630 = vst.msk [vmem:[#allocation2 + $0xc8] sm:$0xff] %vm25_vm0, %v597_v35  ;;  %v649_v37 = vld [vmem:[#allocation2 + $0x48] sm:$0xff] }
  0xf4   :  { %615 = vst.msk [vmem:[#allocation2 + $0x50] sm:$0xff] %vm25_vm0, %v582_v36  ;;  %1270 = vmatmul.msk.f32.gmra.mxu2 %vm25_vm0, %v649_v37 }
  0xf6   :  { %v557_v41 = vpop.f32.mrf.mxu3  ;;  %v430_v42 = vpop.f32.mrf.mxu0 }
  0xf7   :  { %v519_v45 = vpop.f32.mrf.mxu1  ;;  %v558_v46 = vadd.f32 %v557_v41, %v1580_v7  ;;  %v910_v7 = vld [vmem:[%s1821_s2 + $0xc0] sm:$0xff]  ;;  %v909_v41 = vld [vmem:[%s1821_s2 + $0xb8] sm:$0xff] }
  0xf8   :  { %v520_v48 = vadd.f32 %v519_v45, %v430_v42  ;;  %1040 = vperm.xlu0 %1331, %v910_v7   ;;  %v916_v42 = vld [vmem:[%s1821_s2 + $0xf0] sm:$0xff] }
  0xf9   :  { %v598_v49 = vadd.f32 %v558_v46, %v84_v40  ;;  %1035 = vperm.xlu2 %1333, %v909_v41  }
  0xfa   :  { %v583_v50 = vadd.f32 %v520_v48, %v69_v44  ;;  %v89_v44 = vld [vmem:[#allocation2 + $0xf8] sm:$0xff]  ;;  %v74_v48 = vld [vmem:[#allocation2 + $0x80] sm:$0xff] }
  0xfb   :  { %631 = vst.msk [vmem:[#allocation2 + $0xd0] sm:$0xff] %vm25_vm0, %v598_v49  ;;  %v650_v51 = vld [vmem:[#allocation2 + $0x50] sm:$0xff] }
  0xfc   :  { %616 = vst.msk [vmem:[#allocation2 + $0x58] sm:$0xff] %vm25_vm0, %v583_v50  ;;  %1271 = vmatmul.msk.f32.gmra.mxu2 %vm25_vm0, %v650_v51 }
  0xfe   :  { %v559_v55 = vpop.f32.mrf.mxu3  ;;  %v433_v56 = vpop.f32.mrf.mxu0 }
  0xff   :  { %v522_v59 = vpop.f32.mrf.mxu1  ;;  %v560_v61 = vadd.f32 %v559_v55, %v1584_v21  ;;  %v913_v21 = vld [vmem:[%s1821_s2 + $0xd8] sm:$0xff]  ;;  %v912_v55 = vld [vmem:[%s1821_s2 + $0xd0] sm:$0xff] }
 0x100   :  { %v523_v62 = vadd.f32 %v522_v59, %v433_v56  ;;  %1055 = vperm.xlu0 %1331, %v913_v21   ;;  %v75_v56 = vld [vmem:[#allocation2 + $0x88] sm:$0xff] }
 0x101   :  { %v599_v63 = vadd.f32 %v560_v61, %v85_v54  ;;  %1050 = vperm.xlu2 %1333, %v912_v55  }
 0x102   :  { %v584_v0 = vadd.f32 %v523_v62, %v70_v57 }
 0x103   :  { %632 = vst.msk [vmem:[#allocation2 + $0xd8] sm:$0xff] %vm25_vm0, %v599_v63  ;;  %v651_v1 = vld [vmem:[#allocation2 + $0x58] sm:$0xff] }
 0x104   :  { %617 = vst.msk [vmem:[#allocation2 + $0x60] sm:$0xff] %vm25_vm0, %v584_v0  ;;  %1272 = vmatmul.msk.f32.gmra.mxu2 %vm25_vm0, %v651_v1  ;;  %v921_v0 = vpop.permute.xlu0 %920  ;;  %v915_v1 = vld [vmem:[%s1821_s2 + $0xe8] sm:$0xff] }
 0x106   :  { %v562_v6 = vpop.f32.mrf.mxu3  ;;  %v435_v8 = vpop.f32.mrf.mxu0 }
 0x107   :  { %v524_v10 = vpop.f32.mrf.mxu1  ;;  %v563_v11 = vadd.f32 %v562_v6, %v1588_v31  ;;  %v911_v31 = vld [vmem:[%s1821_s2 + $0xc8] sm:$0xff] }
 0x108   :  { %v525_v12 = vadd.f32 %v524_v10, %v435_v8  ;;  %1045 = vperm.xlu1 %1332, %v911_v31   ;;  %1070 = vperm.xlu0 %1331, %v916_v42  }
 0x109   :  { %v600_v13 = vadd.f32 %v563_v11, %v86_v4  ;;  %1065 = vperm.xlu2 %1333, %v915_v1   ;;  %v1730_v4 = vld [vmem:[%s1823_s4] ss:$0 sm:$0xff] }
 0x10a   :  { %v585_v14 = vadd.f32 %v525_v12, %v71_v9  ;;  %v667_v15 = vld [vmem:[#allocation2 + $0xd8] sm:$0xff] }
 0x10b   :  { %633 = vst.msk [vmem:[#allocation2 + $0xe0] sm:$0xff] %vm25_vm0, %v600_v13  ;;  %v652_v16 = vld [vmem:[#allocation2 + $0x60] sm:$0xff]  ;;  %1288 = vmatmul.msk.f32.vlgmr.msra.gmra.mxu3 %vm25_vm0, %v667_v15  ;;  %v77_v15 = vld [vmem:[#allocation2 + $0x98] sm:$0xff] }
 0x10c   :  { %618 = vst.msk [vmem:[#allocation2 + $0x68] sm:$0xff] %vm25_vm0, %v585_v14  ;;  %1273 = vmatmul.msk.f32.gmra.mxu2 %vm25_vm0, %v652_v16  ;;  %v926_v13 = vpop.permute.xlu0 %925 }
 0x10e   :  { %v564_v19 = vpop.f32.mrf.mxu3  ;;  %v438_v20 = vpop.f32.mrf.mxu0 }
 0x10f   :  { %v527_v23 = vpop.f32.mrf.mxu1  ;;  %v565_v24 = vadd.f32 %v564_v19, %v1595_v47  ;;  %v914_v47 = vld [vmem:[%s1821_s2 + $0xe0] sm:$0xff] }
 0x110   :  { %v528_v25 = vadd.f32 %v527_v23, %v438_v20  ;;  %1060 = vperm.xlu1 %1332, %v914_v47   ;;  %v931_v23 = vpop.permute.xlu1 %930 }
 0x111   :  { %v601_v26 = vadd.f32 %v565_v24, %v87_v18 }
 0x112   :  { %v586_v27 = vadd.f32 %v528_v25, %v72_v22  ;;  %v668_v43 = vld [vmem:[#allocation2 + $0xe0] sm:$0xff] }
 0x113   :  { %634 = vst.msk [vmem:[#allocation2 + $0xe8] sm:$0xff] %vm25_vm0, %v601_v26  ;;  %v653_v28 = vld [vmem:[#allocation2 + $0x68] sm:$0xff]  ;;  %1289 = vmatmul.msk.f32.gmra.mxu3 %vm25_vm0, %v668_v43  ;;  %v78_v25 = vld [vmem:[#allocation2 + $0xa0] sm:$0xff] }
 0x114   :  { %619 = vst.msk [vmem:[#allocation2 + $0x70] sm:$0xff] %vm25_vm0, %v586_v27  ;;  %1274 = vmatmul.msk.f32.gmra.mxu2 %vm25_vm0, %v653_v28 }
 0x116   :  { %v567_v32 = vpop.f32.mrf.mxu3  ;;  %v440_v33 = vpop.f32.mrf.mxu0 }
 0x117   :  { %v529_v35 = vpop.f32.mrf.mxu1  ;;  %v568_v36 = vadd.f32 %v567_v32, %v1608_v60  ;;  %v917_v60 = vld [vmem:[%s1821_s2 + $0xf8] sm:$0xff]  ;;  %v941_v32 = vpop.permute.xlu2 %940  ;;  %s1363_s2 = smov [#allocation3]  }
 0x118   :  { %v530_v37 = vadd.f32 %v529_v35, %v440_v33  ;;  %1075 = vperm.xlu1 %1332, %v917_v60   ;;  %v936_v33 = vpop.permute.xlu1 %935  ;;  %s1182_s4 = sshll.u32 %s1363_s2, 4  ;;  %s1183_s4 = int_to_ptr.vmem [resolvable:$true] %s1182_s4 }
 0x119   :  { %v602_v38 = vadd.f32 %v568_v36, %v88_v30  ;;  %v79_v36 = vld [vmem:[#allocation2 + $0xa8] sm:$0xff] }
 0x11a   :  { %v587_v39 = vadd.f32 %v530_v37, %v73_v34  ;;  %v669_v58 = vld [vmem:[#allocation2 + $0xe8] sm:$0xff]  ;;  %v951_v34 = vpop.permute.xlu0 %950 }
 0x11b   :  { %635 = vst.msk [vmem:[#allocation2 + $0xf0] sm:$0xff] %vm25_vm0, %v602_v38  ;;  %v654_v40 = vld [vmem:[#allocation2 + $0x70] sm:$0xff]  ;;  %1290 = vmatmul.msk.f32.gmra.mxu3 %vm25_vm0, %v669_v58 }
 0x11c   :  { %620 = vst.msk [vmem:[#allocation2 + $0x78] sm:$0xff] %vm25_vm0, %v587_v39  ;;  %1275 = vmatmul.msk.f32.gmra.mxu2 %vm25_vm0, %v654_v40 }
 0x11e   :  { %v569_v45 = vpop.f32.mrf.mxu3  ;;  %v443_v46 = vpop.f32.mrf.mxu0 }
 0x11f   :  { %v532_v49 = vpop.f32.mrf.mxu1  ;;  %v570_v50 = vadd.f32 %v569_v45, %v1618_v5  ;;  %v946_v42 = vpop.permute.xlu2 %945  ;;  %v80_v45 = vld [vmem:[#allocation2 + $0xb0] sm:$0xff] }
 0x120   :  { %v533_v51 = vadd.f32 %v532_v49, %v443_v46 }
 0x121   :  { %v603_v52 = vadd.f32 %v570_v50, %v89_v44 }
 0x122   :  { %v588_v53 = vadd.f32 %v533_v51, %v74_v48  ;;  %v670_v7 = vld [vmem:[#allocation2 + $0xf0] sm:$0xff] }
 0x123   :  { %636 = vst.msk [vmem:[#allocation2 + $0xf8] sm:$0xff] %vm25_vm0, %v603_v52  ;;  %v655_v54 = vld [vmem:[#allocation2 + $0x78] sm:$0xff]  ;;  %1291 = vmatmul.msk.f32.gmra.mxu3 %vm25_vm0, %v670_v7  ;;  %v956_v52 = vpop.permute.xlu1 %955 }
 0x124   :  { %621 = vst.msk [vmem:[#allocation2 + $0x80] sm:$0xff] %vm25_vm0, %v588_v53  ;;  %1276 = vmatmul.msk.f32.gmra.mxu2 %vm25_vm0, %v655_v54  ;;  %v966_v50 = vpop.permute.xlu0 %965 }
 0x126   :  { %v445_v5 = vpop.f32.mrf.mxu0 }
 0x127   :  { %v534_v57 = vpop.f32.mrf.mxu1  ;;  %v961_v55 = vpop.permute.xlu2 %960 }
 0x128   :  { %v535_v59 = vadd.f32 %v534_v57, %v445_v5 }
 0x12a   :  { %v589_v61 = vadd.f32 %v535_v59, %v75_v56  ;;  %v671_v62 = vld [vmem:[#allocation2 + $0xf8] sm:$0xff] }
 0x12b   :  { %v656_v63 = vld [vmem:[#allocation2 + $0x80] sm:$0xff]  ;;  %1292 = vmatmul.msk.f32.gmra.mxu3 %vm25_vm0, %v671_v62  ;;  %v81_v56 = vld [vmem:[#allocation2 + $0xb8] sm:$0xff] }
 0x12c   :  { %622 = vst.msk [vmem:[#allocation2 + $0x88] sm:$0xff] %vm25_vm0, %v589_v61  ;;  %1277 = vmatmul.msk.f32.gmra.mxu2 %vm25_vm0, %v656_v63  ;;  %v971_v63 = vpop.permute.xlu1 %970  ;;  %v981_v1 = vpop.permute.xlu0 %980 }
 0x12e   :  { %v448_v2 = vpop.f32.mrf.mxu0 }
 0x12f   :  { %v537_v21 = vpop.f32.mrf.mxu1  ;;  %v790_v8 = vpop.f32.mrf.mxu2 }
 0x130   :  { %v538_v6 = vadd.f32 %v537_v21, %v448_v2  ;;  %v1078_v9 = vmul.f32 %v921_v0, %v790_v8 }
 0x132   :  { %v590_v10 = vadd.f32 %v538_v6, %v76_v3  ;;  %v1114_v11 = vadd.f32 %v1730_v4, %v1078_v9  ;;  %v976_v6 = vpop.permute.xlu2 %975 }
 0x133   :  { %v657_v12 = vld [vmem:[#allocation2 + $0x88] sm:$0xff] }
 0x134   :  { %623 = vst.msk [vmem:[#allocation2 + $0x90] sm:$0xff] %vm25_vm0, %v590_v10  ;;  %1278 = vmatmul.msk.f32.gmra.mxu2 %vm25_vm0, %v657_v12  ;;  %v986_v9 = vpop.permute.xlu1 %985  ;;  %v1752_v12 = vpop.permute.xlu0 %995 }
 0x135   :  { %1146 = vst [vmem:[#allocation3] sm:$0xff] %v1114_v11 }
 0x136   :  { %v450_v14 = vpop.f32.mrf.mxu0 }
 0x137   :  { %v539_v16 = vpop.f32.mrf.mxu1  ;;  %v793_v31 = vpop.f32.mrf.mxu2 }
 0x138   :  { %v540_v17 = vadd.f32 %v539_v16, %v450_v14  ;;  %v1079_v18 = vmul.f32 %v926_v13, %v793_v31 }
 0x13a   :  { %v591_v19 = vadd.f32 %v540_v17, %v77_v15  ;;  %v1115_v20 = vadd.f32 %v1730_v4, %v1079_v18  ;;  %v991_v15 = vpop.permute.xlu2 %990  ;;  %v664_v17 = vld [vmem:[#allocation2 + $0xc0] sm:$0xff] }
 0x13b   :  { %v658_v22 = vld [vmem:[#allocation2 + $0x90] sm:$0xff] }
 0x13c   :  { %624 = vst.msk [vmem:[#allocation2 + $0x98] sm:$0xff] %vm25_vm0, %v591_v19  ;;  %1279 = vmatmul.msk.f32.gmra.mxu2 %vm25_vm0, %v658_v22  ;;  %v1756_v31 = vpop.permute.xlu1 %1000  ;;  %v1758_v18 = vpop.permute.xlu0 %1010 }
 0x13d   :  { %1147 = vst [vmem:[#allocation3 + $0x8] sm:$0xff] %v1115_v20 }
 0x13e   :  { %v453_v24 = vpop.f32.mrf.mxu0 }
 0x13f   :  { %v542_v26 = vpop.f32.mrf.mxu1  ;;  %v796_v43 = vpop.f32.mrf.mxu2 }
 0x140   :  { %v543_v27 = vadd.f32 %v542_v26, %v453_v24  ;;  %v1080_v28 = vmul.f32 %v931_v23, %v796_v43  ;;  %v665_v23 = vld [vmem:[#allocation2 + $0xc8] sm:$0xff] }
 0x142   :  { %v592_v29 = vadd.f32 %v543_v27, %v78_v25  ;;  %v1116_v47 = vadd.f32 %v1730_v4, %v1080_v28 }
 0x143   :  { %v659_v30 = vld [vmem:[#allocation2 + $0x98] sm:$0xff]  ;;  %v1762_v24 = vpop.permute.xlu2 %1005 }
 0x144   :  { %625 = vst.msk [vmem:[#allocation2 + $0xa0] sm:$0xff] %vm25_vm0, %v592_v29  ;;  %1280 = vmatmul.msk.f32.gmra.mxu2 %vm25_vm0, %v659_v30  ;;  %v666_v29 = vld [vmem:[#allocation2 + $0xd0] sm:$0xff] }
 0x145   :  { %1148 = vst [vmem:[#allocation3 + $0x10] sm:$0xff] %v1116_v47  ;;  %v1764_v25 = vpop.permute.xlu1 %1015 }
 0x146   :  { %v455_v35 = vpop.f32.mrf.mxu0 }
 0x147   :  { %v544_v37 = vpop.f32.mrf.mxu1  ;;  %v799_v39 = vpop.f32.mrf.mxu2 }
 0x148   :  { %v545_v38 = vadd.f32 %v544_v37, %v455_v35  ;;  %v1081_v58 = vmul.f32 %v936_v33, %v799_v39 }
 0x14a   :  { %v593_v40 = vadd.f32 %v545_v38, %v79_v36  ;;  %v1117_v41 = vadd.f32 %v1730_v4, %v1081_v58 }
 0x14b   :  { %v660_v60 = vld [vmem:[#allocation2 + $0xa0] sm:$0xff]  ;;  %v1770_v47 = vpop.permute.xlu2 %1020 }
 0x14c   :  { %626 = vst.msk [vmem:[#allocation2 + $0xa8] sm:$0xff] %vm25_vm0, %v593_v40  ;;  %1281 = vmatmul.msk.f32.gmra.mxu2 %vm25_vm0, %v660_v60 }
 0x14d   :  { %1149 = vst [vmem:[#allocation3 + $0x18] sm:$0xff] %v1117_v41 }
 0x14e   :  { %v458_v44 = vpop.f32.mrf.mxu0 }
 0x14f   :  { %v547_v46 = vpop.f32.mrf.mxu1  ;;  %v802_v49 = vpop.f32.mrf.mxu2 }
 0x150   :  { %v548_v48 = vadd.f32 %v547_v46, %v458_v44  ;;  %v1082_v51 = vmul.f32 %v941_v32, %v802_v49  ;;  %v1772_v32 = vpop.permute.xlu1 %1030 }
 0x152   :  { %v594_v53 = vadd.f32 %v548_v48, %v80_v45  ;;  %v1118_v7 = vadd.f32 %v1730_v4, %v1082_v51 }
 0x153   :  { %v661_v54 = vld [vmem:[#allocation2 + $0xa8] sm:$0xff]  ;;  %v1777_v37 = vpop.permute.xlu2 %1035 }
 0x154   :  { %627 = vst.msk [vmem:[#allocation2 + $0xb0] sm:$0xff] %vm25_vm0, %v594_v53  ;;  %1282 = vmatmul.msk.f32.gmra.mxu2 %vm25_vm0, %v661_v54 }
 0x155   :  { %1150 = vst [vmem:[#allocation3 + $0x20] sm:$0xff] %v1118_v7 }
 0x156   :  { %v460_v5 = vpop.f32.mrf.mxu0 }
 0x157   :  { %v549_v57 = vpop.f32.mrf.mxu1  ;;  %v805_v61 = vpop.f32.mrf.mxu2 }
 0x158   :  { %v550_v59 = vadd.f32 %v549_v57, %v460_v5  ;;  %v1083_v62 = vmul.f32 %v946_v42, %v805_v61 }
 0x15a   :  { %v595_v0 = vadd.f32 %v550_v59, %v81_v56  ;;  %v1119_v2 = vadd.f32 %v1730_v4, %v1083_v62 }
 0x15b   :  { %v662_v3 = vld [vmem:[#allocation2 + $0xb0] sm:$0xff]  ;;  %v1783_v46 = vpop.permute.xlu2 %1050 }
 0x15c   :  { %628 = vst.msk [vmem:[#allocation2 + $0xb8] sm:$0xff] %vm25_vm0, %v595_v0  ;;  %1283 = vmatmul.msk.f32.gmra.mxu2 %vm25_vm0, %v662_v3 }
 0x15d   :  { %1151 = vst [vmem:[#allocation3 + $0x28] sm:$0xff] %v1119_v2 }
 0x15f   :  { %v808_v21 = vpop.f32.mrf.mxu2 }
 0x160   :  { %v1084_v8 = vmul.f32 %v951_v34, %v808_v21 }
 0x162   :  { %v1120_v10 = vadd.f32 %v1730_v4, %v1084_v8  ;;  %v1766_v27 = vpop.permute.xlu0 %1025 }
 0x163   :  { %v663_v11 = vld [vmem:[#allocation2 + $0xb8] sm:$0xff] }
 0x164   :  { %1284 = vmatmul.msk.f32.gmra.mxu2 %vm25_vm0, %v663_v11  ;;  %1152 = vst [vmem:[#allocation3 + $0x30] sm:$0xff] %v1120_v10 }
 0x167   :  { %v811_v13 = vpop.f32.mrf.mxu2 }
 0x168   :  { %v1085_v14 = vmul.f32 %v956_v52, %v811_v13 }
 0x16a   :  { %v1121_v16 = vadd.f32 %v1730_v4, %v1085_v14  ;;  %v1774_v34 = vpop.permute.xlu0 %1040 }
 0x16c   :  { %1285 = vmatmul.msk.f32.gmra.mxu2 %vm25_vm0, %v664_v17  ;;  %1153 = vst [vmem:[#allocation3 + $0x38] sm:$0xff] %v1121_v16 }
 0x16f   :  { %v814_v19 = vpop.f32.mrf.mxu2 }
 0x170   :  { %v1086_v20 = vmul.f32 %v961_v55, %v814_v19  ;;  %v1066_v55 = vpop.permute.xlu2 %1065 }
 0x172   :  { %v1122_v22 = vadd.f32 %v1730_v4, %v1086_v20  ;;  %v1056_v40 = vpop.permute.xlu0 %1055 }
 0x174   :  { %1286 = vmatmul.msk.f32.gmra.mxu2 %vm25_vm0, %v665_v23  ;;  %1154 = vst [vmem:[#allocation3 + $0x40] sm:$0xff] %v1122_v22 }
 0x177   :  { %v817_v26 = vpop.f32.mrf.mxu2 }
 0x178   :  { %v1087_v43 = vmul.f32 %v966_v50, %v817_v26 }
 0x17a   :  { %v1123_v28 = vadd.f32 %v1730_v4, %v1087_v43  ;;  %v1779_v39 = vpop.permute.xlu1 %1045 }
 0x17c   :  { %1287 = vmatmul.msk.f32.gmra.mxu2 %vm25_vm0, %v666_v29  ;;  %1155 = vst [vmem:[#allocation3 + $0x48] sm:$0xff] %v1123_v28 }
 0x17f   :  { %v820_v30 = vpop.f32.mrf.mxu2 }
 0x180   :  { %v1088_v33 = vmul.f32 %v971_v63, %v820_v30  ;;  %v1071_v63 = vpop.permute.xlu0 %1070 }
 0x182   :  { %v1124_v35 = vadd.f32 %v1730_v4, %v1088_v33  ;;  %v1061_v49 = vpop.permute.xlu1 %1060 }
 0x184   :  { %1156 = vst [vmem:[#allocation3 + $0x50] sm:$0xff] %v1124_v35 }
 0x187   :  { %v823_v36 = vpop.f32.mrf.mxu2 }
 0x188   :  { %v1089_v38 = vmul.f32 %v976_v6, %v823_v36 }
 0x18a   :  { %v1125_v58 = vadd.f32 %v1730_v4, %v1089_v38  ;;  %v1076_v8 = vpop.permute.xlu1 %1075 }
 0x18c   :  { %1157 = vst [vmem:[#allocation3 + $0x58] sm:$0xff] %v1125_v58 }
 0x18e   :  { %v871_v41 = vpop.f32.mrf.mxu3 }
 0x18f   :  { %v1105_v60 = vmul.f32 %v1056_v40, %v871_v41  ;;  %v826_v42 = vpop.f32.mrf.mxu2 }
 0x190   :  { %v1090_v44 = vmul.f32 %v981_v1, %v826_v42 }
 0x191   :  { %v1141_v45 = vadd.f32 %v1730_v4, %v1105_v60 }
 0x192   :  { %v1126_v48 = vadd.f32 %v1730_v4, %v1090_v44 }
 0x193   :  { %1173 = vst [vmem:[#allocation3 + $0xd8] sm:$0xff] %v1141_v45 }
 0x194   :  { %1158 = vst [vmem:[#allocation3 + $0x60] sm:$0xff] %v1126_v48 }
 0x196   :  { %v874_v50 = vpop.f32.mrf.mxu3 }
 0x197   :  { %v1106_v51 = vmul.f32 %v1061_v49, %v874_v50  ;;  %v829_v52 = vpop.f32.mrf.mxu2 }
 0x198   :  { %v1091_v53 = vmul.f32 %v986_v9, %v829_v52 }
 0x199   :  { %v1142_v7 = vadd.f32 %v1730_v4, %v1106_v51 }
 0x19a   :  { %v1127_v54 = vadd.f32 %v1730_v4, %v1091_v53 }
 0x19b   :  { %1174 = vst [vmem:[#allocation3 + $0xe0] sm:$0xff] %v1142_v7 }
 0x19c   :  { %1159 = vst [vmem:[#allocation3 + $0x68] sm:$0xff] %v1127_v54 }
 0x19e   :  { %v877_v5 = vpop.f32.mrf.mxu3 }
 0x19f   :  { %v1107_v56 = vmul.f32 %v1066_v55, %v877_v5  ;;  %v832_v57 = vpop.f32.mrf.mxu2 }
 0x1a0   :  { %v1092_v59 = vmul.f32 %v991_v15, %v832_v57 }
 0x1a1   :  { %v1143_v61 = vadd.f32 %v1730_v4, %v1107_v56 }
 0x1a2   :  { %v1128_v62 = vadd.f32 %v1730_v4, %v1092_v59 }
 0x1a3   :  { %1175 = vst [vmem:[#allocation3 + $0xe8] sm:$0xff] %v1143_v61 }
 0x1a4   :  { %1160 = vst [vmem:[#allocation3 + $0x70] sm:$0xff] %v1128_v62 }
 0x1a6   :  { %v880_v0 = vpop.f32.mrf.mxu3 }
 0x1a7   :  { %v1108_v1 = vmul.f32 %v1071_v63, %v880_v0  ;;  %v835_v2 = vpop.f32.mrf.mxu2 }
 0x1a8   :  { %v1093_v3 = vmul.f32 %v1752_v12, %v835_v2 }
 0x1a9   :  { %v1144_v21 = vadd.f32 %v1730_v4, %v1108_v1 }
 0x1aa   :  { %v1129_v6 = vadd.f32 %v1730_v4, %v1093_v3 }
 0x1ab   :  { %1176 = vst [vmem:[#allocation3 + $0xf0] sm:$0xff] %v1144_v21 }
 0x1ac   :  { %1161 = vst [vmem:[#allocation3 + $0x78] sm:$0xff] %v1129_v6 }
 0x1ae   :  { %v883_v9 = vpop.f32.mrf.mxu3 }
 0x1af   :  { %v1109_v10 = vmul.f32 %v1076_v8, %v883_v9  ;;  %v838_v11 = vpop.f32.mrf.mxu2 }
 0x1b0   :  { %v1094_v13 = vmul.f32 %v1756_v31, %v838_v11 }
 0x1b1   :  { %v1145_v14 = vadd.f32 %v1730_v4, %v1109_v10 }
 0x1b2   :  { %v1130_v15 = vadd.f32 %v1730_v4, %v1094_v13 }
 0x1b3   :  { %1177 = vst [vmem:[#allocation3 + $0xf8] sm:$0xff] %v1145_v14 }
 0x1b4   :  { %1162 = vst [vmem:[#allocation3 + $0x80] sm:$0xff] %v1130_v15 }
 0x1b7   :  { %v841_v16 = vpop.f32.mrf.mxu2 }
 0x1b8   :  { %v1095_v12 = vmul.f32 %v1762_v24, %v841_v16 }
 0x1ba   :  { %v1131_v17 = vadd.f32 %v1730_v4, %v1095_v12 }
 0x1bc   :  { %1163 = vst [vmem:[#allocation3 + $0x88] sm:$0xff] %v1131_v17 }
 0x1bf   :  { %v844_v19 = vpop.f32.mrf.mxu2 }
 0x1c0   :  { %v1096_v20 = vmul.f32 %v1758_v18, %v844_v19 }
 0x1c2   :  { %v1132_v22 = vadd.f32 %v1730_v4, %v1096_v20 }
 0x1c4   :  { %1164 = vst [vmem:[#allocation3 + $0x90] sm:$0xff] %v1132_v22 }
 0x1c7   :  { %v847_v23 = vpop.f32.mrf.mxu2 }
 0x1c8   :  { %v1097_v31 = vmul.f32 %v1764_v25, %v847_v23 }
 0x1ca   :  { %v1133_v26 = vadd.f32 %v1730_v4, %v1097_v31 }
 0x1cc   :  { %1165 = vst [vmem:[#allocation3 + $0x98] sm:$0xff] %v1133_v26 }
 0x1cf   :  { %v850_v43 = vpop.f32.mrf.mxu2 }
 0x1d0   :  { %v1098_v28 = vmul.f32 %v1770_v47, %v850_v43 }
 0x1d2   :  { %v1134_v24 = vadd.f32 %v1730_v4, %v1098_v28 }
 0x1d4   :  { %1166 = vst [vmem:[#allocation3 + $0xa0] sm:$0xff] %v1134_v24 }
 0x1d7   :  { %v853_v29 = vpop.f32.mrf.mxu2 }
 0x1d8   :  { %v1099_v30 = vmul.f32 %v1766_v27, %v853_v29 }
 0x1da   :  { %v1135_v18 = vadd.f32 %v1730_v4, %v1099_v30 }
 0x1dc   :  { %1167 = vst [vmem:[#allocation3 + $0xa8] sm:$0xff] %v1135_v18 }
 0x1df   :  { %v856_v33 = vpop.f32.mrf.mxu2 }
 0x1e0   :  { %v1100_v35 = vmul.f32 %v1772_v32, %v856_v33 }
 0x1e2   :  { %v1136_v25 = vadd.f32 %v1730_v4, %v1100_v35 }
 0x1e4   :  { %1168 = vst [vmem:[#allocation3 + $0xb0] sm:$0xff] %v1136_v25 }
 0x1e7   :  { %v859_v36 = vpop.f32.mrf.mxu2 }
 0x1e8   :  { %v1101_v38 = vmul.f32 %v1777_v37, %v859_v36 }
 0x1ea   :  { %v1137_v47 = vadd.f32 %v1730_v4, %v1101_v38 }
 0x1ec   :  { %1169 = vst [vmem:[#allocation3 + $0xb8] sm:$0xff] %v1137_v47 }
 0x1ef   :  { %v862_v58 = vpop.f32.mrf.mxu2 }
 0x1f0   :  { %v1102_v40 = vmul.f32 %v1774_v34, %v862_v58 }
 0x1f2   :  { %v1138_v27 = vadd.f32 %v1730_v4, %v1102_v40 }
 0x1f4   :  { %1170 = vst [vmem:[#allocation3 + $0xc0] sm:$0xff] %v1138_v27 }
 0x1f7   :  { %v865_v41 = vpop.f32.mrf.mxu2 }
 0x1f8   :  { %v1103_v60 = vmul.f32 %v1779_v39, %v865_v41 }
 0x1fa   :  { %v1139_v32 = vadd.f32 %v1730_v4, %v1103_v60 }
 0x1fc   :  { %1171 = vst [vmem:[#allocation3 + $0xc8] sm:$0xff] %v1139_v32 }
 0x1ff   :  { %v868_v37 = vpop.f32.mrf.mxu2 }
 0x200   :  { %v1104_v42 = vmul.f32 %v1783_v46, %v868_v37 }
 0x202   :  { %v1140_v34 = vadd.f32 %v1730_v4, %v1104_v42 }
 0x204   :  { %1172 = vst [vmem:[#allocation3 + $0xd0] sm:$0xff] %v1140_v34 }
 0x205   :  { %1190 = dma.vmem_to_hbm [thread:$0]  %s1183_s4, 4096, %s1185_s17, [#allocation4], %s1364_s18, %s1364_s18, %s1365_s19  }
 0x206   :  { %1359 = dma.done.wait [#allocation4], 4096  }
 0x207   :  { %1360 = vsyncadd [#allocation4], 4294963200 }
 0x208   :  { %1195 = vsyncpa [#allocation4], 1 }

</bundles_post_ra>
